<compile_context>
chip_gen: v6e
topology: v6e:2x2x1
jax: 0.10.0
libtpu: 0.0.40
codegen_flags: <defaults>
</compile_context>

<pallas_src>
import functools
import math

import jax
import jax.numpy as jnp
from jax import lax
from jax.experimental import pallas as pl
from jax.experimental.pallas import tpu as pltpu


# --------------------------------------------------------------------------
# Pallas kernel: (tc, K) @ (K, tm) + bias  ->  (tc, tm)   (lane-dense output)
# --------------------------------------------------------------------------
def _conv_matmul_kernel(w_ref, p_ref, b_ref, o_ref):
    # w_ref: (tc, K)   bf16 weight row-block
    # p_ref: (K,  tm)  bf16 patch tile (lane axis = M tile, multiple of 128)
    # b_ref: (tc, 1)   f32 bias column block
    # o_ref: (tc, tm)  f32 output tile (lane-dense stores)
    acc = jnp.dot(w_ref[...], p_ref[...], preferred_element_type=jnp.float32)
    o_ref[...] = (acc + b_ref[...]).astype(o_ref.dtype)


def _pick_tiles(M, Cout):
    """Choose (tm, tc) so the grid has >= 2 parallel steps whenever possible."""
    # Aim for ~4+ M-steps at large M (amortizes ~0.35 us/step, keeps the DMA
    # pipeline full); cap at 2048 (per-tile VMEM ~ (K*tm*2 + Cout*tm*4) * 2
    # buffers, comfortably under even v7x's 64 MiB VMEM for these K).
    tm = (M // 4) // 128 * 128
    tm = max(128, min(2048, tm))
    n_m = -(-M // tm)
    if n_m == 1 and Cout >= 32 and Cout % 16 == 0:
        # Single lane-dense M tile (e.g. the demo's M = 128): split Cout into
        # two row blocks so there are still 2 parallel grid steps (v7x's two
        # TensorCores both get work; pipeline can overlap weight/out DMA).
        tc = Cout // 2           # Cout % 16 == 0  ->  tc is a multiple of 8
    else:
        tc = Cout                # weight stays fully resident across the grid
    return tm, tc


def _matmul_bias_T(w2, patches_T, bias_col):
    """w2: (Cout, K) bf16, patches_T: (K, M) bf16, bias_col: (Cout, 1) f32
    -> (Cout, M) f32.   Caller guarantees M >= 128."""
    Cout, K = w2.shape
    _, M = patches_T.shape
    tm, tc = _pick_tiles(M, Cout)
    n_m = pl.cdiv(M, tm)         # partial last M tile handled by Pallas masking
    n_co = Cout // tc

    return pl.pallas_call(
        _conv_matmul_kernel,
        out_shape=jax.ShapeDtypeStruct((Cout, M), jnp.float32),
        # M outer, Cout inner: patch tile's block index depends only on i, so it
        # stays resident in VMEM across the inner Cout loop (no re-DMA).
        grid=(n_m, n_co),
        in_specs=[
            pl.BlockSpec((tc, K), lambda i, j: (j, 0)),   # weight row-block
            pl.BlockSpec((K, tm), lambda i, j: (0, i)),   # patch tile
            pl.BlockSpec((tc, 1), lambda i, j: (j, 0)),   # bias column block
        ],
        out_specs=pl.BlockSpec((tc, tm), lambda i, j: (j, i)),
        compiler_params=pltpu.CompilerParams(
            # Both axes independent -> megacore sharding on v7x.
            dimension_semantics=("parallel", "parallel"),
        ),
    )(w2, patches_T, bias_col)


# --------------------------------------------------------------------------
# Glue: im2col via static strided slices (no gather), transposed (K, M) layout
# --------------------------------------------------------------------------
def _im2col_T(x, kh, kw, stride, padding):
    """x: NCHW (bf16) -> patches^T of shape (Cin*kh*kw, B*Ho*Wo), plus (Ho, Wo)."""
    B, C, H, W = x.shape
    xp = jnp.pad(x, ((0, 0), (0, 0), (padding, padding), (padding, padding)))
    Hp, Wp = H + 2 * padding, W + 2 * padding
    Ho = (Hp - kh) // stride + 1
    Wo = (Wp - kw) // stride + 1

    # One static strided slice per kernel offset (i, j): cheap copies, no gather.
    slices = []
    for i in range(kh):
        for j in range(kw):
            s = lax.slice(
                xp,
                (0, 0, i, j),
                (B, C, i + (Ho - 1) * stride + 1, j + (Wo - 1) * stride + 1),
                (1, 1, stride, stride))                  # (B, C, Ho, Wo)
            slices.append(s)
    pat = jnp.stack(slices, axis=0)                      # (kh*kw, B, C, Ho, Wo)
    pat = pat.transpose(2, 0, 1, 3, 4)                   # (C, kh*kw, B, Ho, Wo)
    # K order = (Cin, kh, kw)  <->  weight.reshape(Cout, Cin*kh*kw)
    return pat.reshape(C * kh * kw, B * Ho * Wo), Ho, Wo


# --------------------------------------------------------------------------
# Module-level API (init hoists weight/bias prep out of the forward path)
# --------------------------------------------------------------------------
def conv_embedding_init(weight, bias):
    """Precompute the kernel-ready parameters once (review item: hoist prep)."""
    Cout, Cin, kh, kw = weight.shape
    w2 = weight.reshape(Cout, Cin * kh * kw).astype(jnp.bfloat16)   # (Cout, K)
    bias_col = bias.reshape(Cout, 1).astype(jnp.float32)            # (Cout, 1)
    return w2, bias_col


def conv_embedding_forward(x, w2, bias_col, *, kh, kw, stride, padding):
    """Equivalent of nn.Conv2d(..., bias=True)(x), x in NCHW, f32 output."""
    B, C, H, W = x.shape
    Cout = w2.shape[0]

    # bf16 before im2col: all im2col intermediates are half-width.
    patches_T, Ho, Wo = _im2col_T(x.astype(jnp.bfloat16), kh, kw, stride, padding)
    M = patches_T.shape[1]

    Mk = M
    if M < 128:   # tiny-M edge only; never hit at the demo shape (M = 128)
        patches_T = jnp.pad(patches_T, ((0, 0), (0, 128 - M)))
        Mk = 128

    out = _matmul_bias_T(w2, patches_T, bias_col)        # (Cout, Mk) f32
    out = out[:, :M]
    # (Cout, B, Ho, Wo) -> (B, Cout, Ho, Wo): cheap leading-dim permute.
    return out.reshape(Cout, B, Ho, Wo).transpose(1, 0, 2, 3)


# --------------------------------------------------------------------------
# Main
# --------------------------------------------------------------------------
if __name__ == "__main__":
    # Module config (small, consistent with the PiT patch-embedding conv).
    in_channels, out_channels = 4, 32
    patch_size, stride, padding = 4, 2, 1
    B, H, W = 2, 16, 16

    key = jax.random.PRNGKey(0)
    kx, kwt, kb = jax.random.split(key, 3)

    # Deterministic parameter init (PyTorch Conv2d default: U(-1/sqrt(fan_in), +)).
    fan_in = in_channels * patch_size * patch_size
    bound = 1.0 / math.sqrt(fan_in)
    weight = jax.random.uniform(
        kwt, (out_channels, in_channels, patch_size, patch_size),
        dtype=jnp.float32, minval=-bound, maxval=bound)
    bias = jax.random.uniform(
        kb, (out_channels,), dtype=jnp.float32, minval=-bound, maxval=bound)

    x = jax.random.normal(kx, (B, in_channels, H, W), dtype=jnp.float32)

    # Hoisted, one-time parameter prep (not part of the per-call forward).
    w2, bias_col = conv_embedding_init(weight, bias)

    fwd = jax.jit(functools.partial(conv_embedding_forward,
                                    kh=patch_size, kw=patch_size,
                                    stride=stride, padding=padding))
    out = jax.block_until_ready(fwd(x, w2, bias_col))

    # Reference 1: same bf16 operand rounding as the kernel (tight tolerance;
    # only f32 summation order differs).
    xb = x.astype(jnp.bfloat16).astype(jnp.float32)
    wb = weight.astype(jnp.bfloat16).astype(jnp.float32)
    ref_bf16 = lax.conv_general_dilated(
        xb, wb, window_strides=(stride, stride),
        padding=((padding, padding), (padding, padding)),
        dimension_numbers=("NCHW", "OIHW", "NCHW"),
    ) + bias.reshape(1, out_channels, 1, 1)

    # Reference 2: full-precision conv (loose tolerance for bf16 operand cast).
    ref_f32 = lax.conv_general_dilated(
        x, weight, window_strides=(stride, stride),
        padding=((padding, padding), (padding, padding)),
        dimension_numbers=("NCHW", "OIHW", "NCHW"),
    ) + bias.reshape(1, out_channels, 1, 1)

    ref_bf16, ref_f32 = jax.block_until_ready((ref_bf16, ref_f32))

    Ho = (H + 2 * padding - patch_size) // stride + 1
    assert out.shape == ref_f32.shape == (B, out_channels, Ho, Ho), out.shape
    assert jnp.allclose(out, ref_bf16, atol=2e-3, rtol=2e-3), float(
        jnp.max(jnp.abs(out - ref_bf16)))
    assert jnp.allclose(out, ref_f32, atol=5e-2, rtol=5e-2), float(
        jnp.max(jnp.abs(out - ref_f32)))

    print("KERNEL_OK")
</pallas_src>

<mosaic_0001>
module attributes {stable_mosaic.version = 11 : i64} {
  func.func @_conv_matmul_kernel(%arg0: i32, %arg1: i32, %arg2: memref<16x64xbf16, #tpu.memory_space<vmem>>, %arg3: memref<64x128xbf16, #tpu.memory_space<vmem>>, %arg4: memref<16x1xf32, #tpu.memory_space<vmem>>, %arg5: memref<16x128xf32, #tpu.memory_space<vmem>>) attributes {dimension_semantics = [#tpu.dimension_semantics<parallel>, #tpu.dimension_semantics<parallel>], iteration_bounds = array<i64: 1, 2>, scalar_prefetch = 0 : i64, scratch_operands = 0 : i64, tpu.core_type = #tpu.core_type<tc>, window_params = [{transform_indices = @transform_0, window_bounds = array<i64: 16, 64>}, {transform_indices = @transform_1, window_bounds = array<i64: 64, 128>}, {transform_indices = @transform_2, window_bounds = array<i64: 16, 1>}, {transform_indices = @transform_3, window_bounds = array<i64: 16, 128>}]} {
    %c0 = arith.constant 0 : index
    %c0_0 = arith.constant 0 : index
    %0 = vector.load %arg2[%c0, %c0_0] : memref<16x64xbf16, #tpu.memory_space<vmem>>, vector<16x64xbf16>
    %c0_1 = arith.constant 0 : index
    %c0_2 = arith.constant 0 : index
    %1 = vector.load %arg3[%c0_1, %c0_2] : memref<64x128xbf16, #tpu.memory_space<vmem>>, vector<64x128xbf16>
    %cst = arith.constant dense<0.000000e+00> : vector<16x128xf32>
    %2 = tpu.matmul %0, %1, %cst {dimension_numbers = #tpu.dot_dimension_numbers<[1], [0], [0], [1], [0, 0, 1, 1], [], []>} : vector<16x64xbf16>, vector<64x128xbf16>, vector<16x128xf32> -> vector<16x128xf32>
    %c0_3 = arith.constant 0 : index
    %c0_4 = arith.constant 0 : index
    %3 = vector.load %arg4[%c0_3, %c0_4] : memref<16x1xf32, #tpu.memory_space<vmem>>, vector<16x1xf32>
    %4 = vector.broadcast %3 : vector<16x1xf32> to vector<16x128xf32>
    %5 = arith.addf %2, %4 : vector<16x128xf32>
    %c0_5 = arith.constant 0 : index
    %c0_6 = arith.constant 0 : index
    %6 = vector.load %arg5[%c0_5, %c0_6] : memref<16x128xf32, #tpu.memory_space<vmem>>, vector<16x128xf32>
    tpu.vector_store %arg5[%c0_5, %c0_6], %5 {strides = array<i32>} : memref<16x128xf32, #tpu.memory_space<vmem>>, vector<16x128xf32>,
    return
  }
  func.func @transform_0(%arg0: i32, %arg1: i32) -> (i32, i32) {
    %c0_i32 = arith.constant 0 : i32
    %c0_i32_0 = arith.constant 0 : i32
    return %arg1, %c0_i32 : i32, i32
  }
  func.func @transform_1(%arg0: i32, %arg1: i32) -> (i32, i32) {
    %c0_i32 = arith.constant 0 : i32
    %c0_i32_0 = arith.constant 0 : i32
    return %c0_i32, %arg0 : i32, i32
  }
  func.func @transform_2(%arg0: i32, %arg1: i32) -> (i32, i32) {
    %c0_i32 = arith.constant 0 : i32
    %c0_i32_0 = arith.constant 0 : i32
    return %arg1, %c0_i32 : i32, i32
  }
  func.func @transform_3(%arg0: i32, %arg1: i32) -> (i32, i32) {
    %c0_i32 = arith.constant 0 : i32
    return %arg1, %arg0 : i32, i32
  }
}

</mosaic_0001>

<bundles_post_ra>
// kernel: conv_embedding_forward.1
= control target key start
LH: loop header
LB: loop body
LE: loop exit
PB: predicated region body
PF: predicated region fallthrough
CT: control target
= control target key end

     0   :  { %s551_s12 = smov 0   ;;  %s553_s13 = smov 0   ;;  %s599_s0 = inlined_call_operand.vmem [shape: bf16[32,64], index: 0, kind: input, shape index: {}]   ;;  %s600_s1 = inlined_call_operand.vmem [shape: bf16[64,128], index: 1, kind: input, shape index: {}]   ;;  %s601_s2 = inlined_call_operand.vmem [shape: f32[32,1], index: 2, kind: input, shape index: {}]   ;;  %s602_s3 = inlined_call_operand.vmem [shape: f32[32,128], index: 3, kind: output, shape index: {}]  }
   0x1   :  { %s555_s14 = smov 0  }
   0x2 LB: > { %s22_s15 = sadd.s32 1, %s522_s13  ;;  %p439_p0 = scmp.ge.s32.totalorder %s526_s14, 1  ;;  %s526_s14 = sphi %s555_s14, %s13_s14   ;;  %s522_s13 = sphi %s553_s13, %s604_s13   ;;  %s518_s12 = sphi %s551_s12, %s603_s12  }
   0x3   : > { %p23_p1 = scmp.ge.s32.totalorder %s22_s15, 2  ;;  %p172_p2 = scmp.lt.s32.totalorder %s526_s14, 3 }
   0x5   : > { %s606_s15 = smov (%p23_p1, %s22_s15), 0  ;;  %p173_p3 = pnand %p439_p0, %p172_p2 }
   0x6   : > { %s440_s20 = sshll.u32 (!%p173_p3), %s518_s12, 1 }
   0x7   : > { %176 = sbr.rel (%p173_p3) target bundleno = 229 (0xe5), region = 32  ;;  %p209_p4 = scmp.lt.s32.totalorder (!%p173_p3), %s440_s20, 3 }
   0xc   : > { %v499_v0 = vld [vmem:[%s600_s1 + $0x18] sm:$0xff]   ;;  %v528_v1 = vmov 0.0   ;;  %v500_v2 = vld [vmem:[%s600_s1 + $0x10] sm:$0xff]   ;;  %vm529_vm0 = vmmov 0   ;;  %s608_s20 = smov (!%p209_p4, %s440_s20), 3  ;;  %v530_v3 = vmov 0  }
   0xd   : > { %459 = vmatprep.subr.bf16.mxu0 %v528_v1  ;;  %467 = vmatprep.mubr.msk.bf16.mxu0 %vm529_vm0, %v528_v1  ;;  %v501_v4 = vld [vmem:[%s600_s1 + $0x8] sm:$0xff]   ;;  %s441_s23 = sshll.u32 %s608_s20, 2  ;;  %s443_s24 = sshll.u32 %s608_s20, 3  ;;  %v502_v5 = vld [vmem:[%s600_s1] sm:$0xff]   ;;  %vm285_vm1 = vcmask 523264  }
   0xe   : > { %460 = vmatpush3.bf16.msra.mxu0 %v499_v0  ;;  %498 = vset.pattern.permute.xlu0 %v530_v3  ;;  %s212_s27 = scalar_lea.vmem %s599_s0, %s441_s23  ;;  %s222_s30 = scalar_lea.vmem %s601_s2, %s443_s24 }
   0xf   : > { %461 = vmatprep.subr.bf16.mxu0 %v528_v1  ;;  %v244_v6 = vld [vmem:[%s222_s30] sm:$0xff]  ;;  %v245_v7 = vld [vmem:[%s222_s30 + $0x8] sm:$0xff]  ;;  %s231_s8 = scalar_lea.vmem %s602_s3, %s443_s24 }
  0x10   : > { %248 = vperm.xlu0 %498, %v244_v6   ;;  %v503_v8 = vld [vmem:[%s212_s27] sm:$0xff]  }
  0x12   : > { %462 = vmatpush3.bf16.msra.mxu0 %v500_v2 }
  0x13   : > { %463 = vmatprep.subr.bf16.mxu0 %v528_v1 }
  0x14   : > { %253 = vperm.xlu0 %498, %v245_v7  }
  0x16   : > { %464 = vmatpush3.bf16.msra.mxu0 %v501_v4 }
  0x17   : > { %465 = vmatprep.subr.bf16.mxu0 %v528_v1 }
  0x1a   : > { %466 = vmatpush3.bf16.msra.mxu0 %v502_v5 }
  0x1d   : > { %468 = vmatmul.mubr.msk.bf16.vlgmr.msra.gmra.mxu0 %vm285_vm1, %v503_v8 }
  0x8b   : > { %v249_v9 = vpop.permute.xlu0 %248 }
  0x8f   : > { %v254_v13 = vpop.permute.xlu0 %253 }
  0xdd   : > { %v323_v10 = vpop.f32.mrf.mxu0 }
  0xde   : > { %v324_v11 = vadd.f32 %v323_v10, %v249_v9 }
  0xdf   : > { %v469_v12 = vpop.f32.mrf.mxu0 }
  0xe0   : > { %330 = vst [vmem:[%s231_s8] sm:$0xff] %v324_v11 }
  0xe1   : > { %v326_v14 = vpop.f32.mrf.mxu0 }
  0xe2   : > { %v327_v15 = vadd.f32 %v326_v14, %v254_v13 }
  0xe3   : > { %v470_v16 = vpop.f32.mrf.mxu0 }
  0xe4   : > { %331 = vst [vmem:[%s231_s8 + $0x8] sm:$0xff] %v327_v15 }
  0xe5 PF: > { %s13_s14 = sadd.s32 1, %s526_s14   ;;  %s603_s12 = smov %s522_s13 }
  0xe6   : > { %p10_p5 = scmp.ge.s32.totalorder %s13_s14, 4   ;;  %s604_s13 = smov %s606_s15 }
  0xe8   :  { %12 = sbr.rel (!%p10_p5) target bundleno = 2 (0x2), region = 68 }

</bundles_post_ra>
